<compile_context>
chip_gen: v7x
topology: tpu7x:2x2x1
jax: 0.10.0
libtpu: 0.0.40
codegen_flags: <defaults>
</compile_context>

<pallas_src>
import functools

import jax
import jax.numpy as jnp
from jax.experimental import pallas as pl
from jax.experimental.pallas import tpu as pltpu

LANE = 128
VMEM_LIMIT_BYTES = 32 * 1024 * 1024


def _round_up(x, m):
    return ((x + m - 1) // m) * m


# ------------------------------- kernels ------------------------------------ #

def project_kernel(x_ref, w_ref, out_ref):
    """out = X_tile @ W  (bf16 operands, f32 MXU accumulation, bf16 store)."""
    out_ref[...] = jnp.dot(
        x_ref[...], w_ref[...], preferred_element_type=jnp.float32
    ).astype(out_ref.dtype)


def make_aggregate_kernel(finalize):
    """acc(i) += A[i, k] @ XW[k] over K tiles; out(i) = finalize(acc + b) on last K."""

    def kernel(adj_ref, xw_ref, b_ref, out_ref, acc_ref):
        k = pl.program_id(1)

        @pl.when(k == 0)
        def _():
            acc_ref[...] = jnp.zeros_like(acc_ref)

        acc_ref[...] += jnp.dot(
            adj_ref[...], xw_ref[...], preferred_element_type=jnp.float32
        )

        @pl.when(k == pl.num_programs(1) - 1)
        def _():
            # Bias broadcast + activation happen exactly once per row tile (finalize).
            out_ref[...] = finalize(acc_ref[...] + b_ref[...]).astype(out_ref.dtype)

    return kernel


def _relu(h):
    return jnp.maximum(h, 0.0)


def _masked_log_softmax(h, num_valid):
    """log_softmax over the first `num_valid` lanes; padded lanes are excluded."""
    col = jax.lax.broadcasted_iota(jnp.int32, h.shape, 1)
    h = jnp.where(col < num_valid, h, -1e30)
    m = jnp.max(h, axis=1, keepdims=True)
    z = h - m
    lse = jnp.log(jnp.sum(jnp.exp(z), axis=1, keepdims=True))
    return z - lse


# --------------------------- pallas_call wrappers ---------------------------- #

def _project(x_p, w_p, tm):
    n_pad, f_pad = x_p.shape
    h_pad = w_p.shape[1]
    return pl.pallas_call(
        project_kernel,
        out_shape=jax.ShapeDtypeStruct((n_pad, h_pad), jnp.bfloat16),
        grid_spec=pltpu.PrefetchScalarGridSpec(
            num_scalar_prefetch=0,
            grid=(n_pad // tm,),
            in_specs=[
                pl.BlockSpec((tm, f_pad), lambda i: (i, 0)),
                pl.BlockSpec((f_pad, h_pad), lambda i: (0, 0)),
            ],
            out_specs=pl.BlockSpec((tm, h_pad), lambda i: (i, 0)),
        ),
        compiler_params=pltpu.CompilerParams(
            dimension_semantics=("parallel",),
            vmem_limit_bytes=VMEM_LIMIT_BYTES,
        ),
    )(x_p, w_p)


def _aggregate(adj_p, xw_p, b_p, finalize, out_dtype, tm, tk):
    n_pad = adj_p.shape[0]
    h_pad = xw_p.shape[1]
    return pl.pallas_call(
        make_aggregate_kernel(finalize),
        out_shape=jax.ShapeDtypeStruct((n_pad, h_pad), out_dtype),
        grid_spec=pltpu.PrefetchScalarGridSpec(
            num_scalar_prefetch=0,
            grid=(n_pad // tm, n_pad // tk),
            in_specs=[
                pl.BlockSpec((tm, tk), lambda i, k: (i, k)),       # A_hat tile
                pl.BlockSpec((tk, h_pad), lambda i, k: (k, 0)),    # XW K-slab
                pl.BlockSpec((1, h_pad), lambda i, k: (0, 0)),     # bias row
            ],
            out_specs=pl.BlockSpec((tm, h_pad), lambda i, k: (i, 0)),
            scratch_shapes=[pltpu.VMEM((tm, h_pad), jnp.float32)],
        ),
        compiler_params=pltpu.CompilerParams(
            dimension_semantics=("parallel", "arbitrary"),
            vmem_limit_bytes=VMEM_LIMIT_BYTES,
        ),
    )(adj_p, xw_p, b_p)


# --------------------------------- glue -------------------------------------- #

def normalized_adjacency(edge_index, num_nodes):
    """Dense D^{-1/2} (A + I) D^{-1/2}, matching GCNConv's symmetric norm (glue)."""
    src = edge_index[0]
    dst = edge_index[1]
    a = jnp.zeros((num_nodes, num_nodes), jnp.float32)
    a = a.at[dst, src].add(1.0)  # message passing j -> i  =>  A_hat[i, j]
    a = a + jnp.eye(num_nodes, dtype=jnp.float32)  # self loops
    deg = jnp.sum(a, axis=1)
    dinv = jnp.where(deg > 0, 1.0 / jnp.sqrt(deg), 0.0)
    return dinv[:, None] * a * dinv[None, :]


def _pad_to(x, shape):
    return jnp.pad(x, [(0, t - s) for s, t in zip(x.shape, shape)])


def gcn_forward(x, edge_index, w1, b1, w2, b2):
    n, f = x.shape
    h = w1.shape[1]
    c = w2.shape[1]

    # --- tile plan (tiny VMEM footprint; portable across v5e / v6e / v7x) ---
    if n <= 128:
        n_pad, tm, tk = 128, 128, 128
    elif n <= 256:
        n_pad, tm, tk = 256, 256, 256
    else:
        n_pad, tm, tk = _round_up(n, 512), 256, 512

    f_pad = _round_up(max(f, LANE), LANE)
    h_pad = _round_up(max(h, LANE), LANE)
    c_pad = _round_up(max(c, LANE), LANE)

    # TODO(synk): for large sparse graphs replace the dense A_hat with a CSR
    # scalar-prefetch gather (PrefetchScalarGridSpec + data-dependent index_map /
    # manual make_async_copy) so HBM traffic and FLOPs scale with |E| instead of N^2.
    adj = normalized_adjacency(edge_index, n)
    adj_p = _pad_to(adj, (n_pad, n_pad)).astype(jnp.bfloat16)
    x_p = _pad_to(x, (n_pad, f_pad)).astype(jnp.bfloat16)
    w1_p = _pad_to(w1, (f_pad, h_pad)).astype(jnp.bfloat16)
    w2_p = _pad_to(w2, (h_pad, c_pad)).astype(jnp.bfloat16)
    b1_p = _pad_to(b1.reshape(1, -1), (1, h_pad)).astype(jnp.float32)
    b2_p = _pad_to(b2.reshape(1, -1), (1, c_pad)).astype(jnp.float32)

    # ---- layer 1: relu(A_hat @ (X @ W1) + b1) ----
    xw1 = _project(x_p, w1_p, tm)
    h1 = _aggregate(adj_p, xw1, b1_p, _relu, jnp.bfloat16, tm, tk)

    # ---- layer 2: log_softmax(A_hat @ (H1 @ W2) + b2) ----
    hw2 = _project(h1, w2_p, tm)
    out_p = _aggregate(
        adj_p,
        hw2,
        b2_p,
        functools.partial(_masked_log_softmax, num_valid=c),
        jnp.float32,
        tm,
        tk,
    )

    return out_p[:n, :c]


if __name__ == "__main__":
    # Small synthetic "Cora-like" problem.
    N = 32        # number of nodes
    E = 64        # number of edges
    F_IN = 32     # num_node_features
    HIDDEN = 16   # GCN hidden size (matches module)
    C = 7         # num_classes

    key = jax.random.PRNGKey(0)
    kx, ke, kw1, kw2 = jax.random.split(key, 4)

    x = jax.random.normal(kx, (N, F_IN), dtype=jnp.float32)
    edge_index = jax.random.randint(ke, (2, E), 0, N, dtype=jnp.int32)

    # Deterministic parameter init (Glorot-style scale for weights, zero bias).
    w1 = jax.random.normal(kw1, (F_IN, HIDDEN), dtype=jnp.float32) * (1.0 / jnp.sqrt(F_IN))
    b1 = jnp.zeros((HIDDEN,), jnp.float32)
    w2 = jax.random.normal(kw2, (HIDDEN, C), dtype=jnp.float32) * (1.0 / jnp.sqrt(HIDDEN))
    b2 = jnp.zeros((C,), jnp.float32)

    out = jax.jit(gcn_forward)(x, edge_index, w1, b1, w2, b2)
    jax.block_until_ready(out)

    assert out.shape == (N, C)
    assert bool(jnp.all(jnp.isfinite(out)))
    # rows of log_softmax should exp-sum to 1
    assert jnp.allclose(jnp.sum(jnp.exp(out), axis=1), 1.0, atol=1e-3)

    # Cross-check against a plain-JAX f32 reference (bf16 MXU operands -> loose atol).
    adj_ref = normalized_adjacency(edge_index, N)
    h1_ref = jnp.maximum(adj_ref @ (x @ w1) + b1, 0.0)
    logits_ref = adj_ref @ (h1_ref @ w2) + b2
    ref = jax.nn.log_softmax(logits_ref, axis=1)
    max_err = float(jnp.max(jnp.abs(out - ref)))
    assert max_err < 0.15, max_err

    print("KERNEL_OK")
</pallas_src>

<mosaic_0001>
module attributes {stable_mosaic.version = 11 : i64} {
  func.func private @main(%arg0: i32) attributes {dimension_semantics = [#tpu.dimension_semantics<core_parallel>], iteration_bounds = array<i64: 2>, tpu.core_type = #tpu.core_type<sc_scalar_subcore>, window_params = []} {
    return
  }
}

module attributes {stable_mosaic.version = 11 : i64} {
  func.func private @main(%arg0: i32) attributes {dimension_semantics = [#tpu.dimension_semantics<core_parallel>], iteration_bounds = array<i64: 2>, tpu.core_type = #tpu.core_type<sc_scalar_subcore>, window_params = []} {
    return
  }
}

module attributes {stable_mosaic.version = 11 : i64} {
  func.func @project_kernel(%arg0: i32, %arg1: memref<128x128xbf16, #tpu.memory_space<vmem>>, %arg2: memref<128x128xbf16, #tpu.memory_space<vmem>>, %arg3: memref<128x128xbf16, #tpu.memory_space<vmem>>) attributes {dimension_semantics = [#tpu.dimension_semantics<parallel>], iteration_bounds = array<i64: 1>, scalar_prefetch = 0 : i64, scratch_operands = 0 : i64, tpu.core_type = #tpu.core_type<tc>, window_params = [{transform_indices = @transform_0, window_bounds = array<i64: 128, 128>}, {pipeline_mode = #tpu.pipeline_mode<synchronous>, transform_indices = @transform_1, window_bounds = array<i64: 128, 128>}, {transform_indices = @transform_2, window_bounds = array<i64: 128, 128>}]} {
    %c0 = arith.constant 0 : index
    %c0_0 = arith.constant 0 : index
    %0 = vector.load %arg1[%c0, %c0_0] : memref<128x128xbf16, #tpu.memory_space<vmem>>, vector<128x128xbf16>
    %c0_1 = arith.constant 0 : index
    %c0_2 = arith.constant 0 : index
    %1 = vector.load %arg2[%c0_1, %c0_2] : memref<128x128xbf16, #tpu.memory_space<vmem>>, vector<128x128xbf16>
    %cst = arith.constant dense<0.000000e+00> : vector<128x128xf32>
    %2 = tpu.matmul %0, %1, %cst {dimension_numbers = #tpu.dot_dimension_numbers<[1], [0], [0], [1], [0, 0, 1, 1], [], []>} : vector<128x128xbf16>, vector<128x128xbf16>, vector<128x128xf32> -> vector<128x128xf32>
    %3 = arith.truncf %2 : vector<128x128xf32> to vector<128x128xbf16>
    %c0_3 = arith.constant 0 : index
    %c0_4 = arith.constant 0 : index
    %4 = vector.load %arg3[%c0_3, %c0_4] : memref<128x128xbf16, #tpu.memory_space<vmem>>, vector<128x128xbf16>
    tpu.vector_store %arg3[%c0_3, %c0_4], %3 {strides = array<i32>} : memref<128x128xbf16, #tpu.memory_space<vmem>>, vector<128x128xbf16>,
    return
  }
  func.func @transform_0(%arg0: i32) -> (i32, i32) {
    %c0_i32 = arith.constant 0 : i32
    %c0_i32_0 = arith.constant 0 : i32
    return %arg0, %c0_i32 : i32, i32
  }
  func.func @transform_1(%arg0: i32) -> (i32, i32) {
    %c0_i32 = arith.constant 0 : i32
    %c0_i32_0 = arith.constant 0 : i32
    %c0_i32_1 = arith.constant 0 : i32
    return %c0_i32, %c0_i32_0 : i32, i32
  }
  func.func @transform_2(%arg0: i32) -> (i32, i32) {
    %c0_i32 = arith.constant 0 : i32
    %c0_i32_0 = arith.constant 0 : i32
    return %arg0, %c0_i32 : i32, i32
  }
}

module attributes {stable_mosaic.version = 11 : i64} {
  func.func @kernel(%arg0: i32, %arg1: i32, %arg2: memref<128x128xbf16, #tpu.memory_space<vmem>>, %arg3: memref<128x128xbf16, #tpu.memory_space<vmem>>, %arg4: memref<1x128xf32, #tpu.memory_space<vmem>>, %arg5: memref<128x128xbf16, #tpu.memory_space<vmem>>, %arg6: memref<128x128xf32, #tpu.memory_space<vmem>>) attributes {dimension_semantics = [#tpu.dimension_semantics<parallel>, #tpu.dimension_semantics<arbitrary>], iteration_bounds = array<i64: 1, 1>, scalar_prefetch = 0 : i64, scratch_operands = 1 : i64, tpu.core_type = #tpu.core_type<tc>, window_params = [{transform_indices = @transform_0, window_bounds = array<i64: 128, 128>}, {transform_indices = @transform_1, window_bounds = array<i64: 128, 128>}, {pipeline_mode = #tpu.pipeline_mode<synchronous>, transform_indices = @transform_2, window_bounds = array<i64: 1, 128>}, {transform_indices = @transform_3, window_bounds = array<i64: 128, 128>}]} {
    %c0_i32 = arith.constant 0 : i32
    %0 = arith.cmpi eq, %arg1, %c0_i32 : i32
    %1 = arith.extui %0 : i1 to i32
    %c0_i32_0 = arith.constant 0 : i32
    %2 = arith.cmpi ne, %1, %c0_i32_0 : i32
    scf.if %2 {
      %cst_10 = arith.constant 0.000000e+00 : f32
      %12 = vector.broadcast %cst_10 : f32 to vector<128x128xf32>
      %c0_11 = arith.constant 0 : index
      %c0_12 = arith.constant 0 : index
      %13 = vector.load %arg6[%c0_11, %c0_12] : memref<128x128xf32, #tpu.memory_space<vmem>>, vector<128x128xf32>
      tpu.vector_store %arg6[%c0_11, %c0_12], %12 {strides = array<i32>} : memref<128x128xf32, #tpu.memory_space<vmem>>, vector<128x128xf32>,
    } else {
    }
    %c0 = arith.constant 0 : index
    %c0_1 = arith.constant 0 : index
    %3 = vector.load %arg6[%c0, %c0_1] : memref<128x128xf32, #tpu.memory_space<vmem>>, vector<128x128xf32>
    %c0_2 = arith.constant 0 : index
    %c0_3 = arith.constant 0 : index
    %4 = vector.load %arg2[%c0_2, %c0_3] : memref<128x128xbf16, #tpu.memory_space<vmem>>, vector<128x128xbf16>
    %c0_4 = arith.constant 0 : index
    %c0_5 = arith.constant 0 : index
    %5 = vector.load %arg3[%c0_4, %c0_5] : memref<128x128xbf16, #tpu.memory_space<vmem>>, vector<128x128xbf16>
    %cst = arith.constant dense<0.000000e+00> : vector<128x128xf32>
    %6 = tpu.matmul %4, %5, %cst {dimension_numbers = #tpu.dot_dimension_numbers<[1], [0], [0], [1], [0, 0, 1, 1], [], []>} : vector<128x128xbf16>, vector<128x128xbf16>, vector<128x128xf32> -> vector<128x128xf32>
    %7 = arith.addf %3, %6 : vector<128x128xf32>
    %c0_6 = arith.constant 0 : index
    %c0_7 = arith.constant 0 : index
    %8 = vector.load %arg6[%c0_6, %c0_7] : memref<128x128xf32, #tpu.memory_space<vmem>>, vector<128x128xf32>
    tpu.vector_store %arg6[%c0_6, %c0_7], %7 {strides = array<i32>} : memref<128x128xf32, #tpu.memory_space<vmem>>, vector<128x128xf32>,
    %c0_i32_8 = arith.constant 0 : i32
    %9 = arith.cmpi eq, %arg1, %c0_i32_8 : i32
    %10 = arith.extui %9 : i1 to i32
    %c0_i32_9 = arith.constant 0 : i32
    %11 = arith.cmpi ne, %10, %c0_i32_9 : i32
    scf.if %11 {
      %c0_10 = arith.constant 0 : index
      %c0_11 = arith.constant 0 : index
      %12 = vector.load %arg6[%c0_10, %c0_11] : memref<128x128xf32, #tpu.memory_space<vmem>>, vector<128x128xf32>
      %c0_12 = arith.constant 0 : index
      %c0_13 = arith.constant 0 : index
      %13 = vector.load %arg4[%c0_12, %c0_13] : memref<1x128xf32, #tpu.memory_space<vmem>>, vector<1x128xf32>
      %14 = vector.broadcast %13 : vector<1x128xf32> to vector<128x128xf32>
      %15 = arith.addf %12, %14 : vector<128x128xf32>
      %cst_14 = arith.constant 0.000000e+00 : f32
      %16 = vector.broadcast %cst_14 : f32 to vector<128x128xf32>
      %17 = arith.maximumf %15, %16 : vector<128x128xf32>
      %18 = arith.truncf %17 : vector<128x128xf32> to vector<128x128xbf16>
      %c0_15 = arith.constant 0 : index
      %c0_16 = arith.constant 0 : index
      %19 = vector.load %arg5[%c0_15, %c0_16] : memref<128x128xbf16, #tpu.memory_space<vmem>>, vector<128x128xbf16>
      tpu.vector_store %arg5[%c0_15, %c0_16], %18 {strides = array<i32>} : memref<128x128xbf16, #tpu.memory_space<vmem>>, vector<128x128xbf16>,
    } else {
    }
    return
  }
  func.func @transform_0(%arg0: i32, %arg1: i32) -> (i32, i32) {
    %c0_i32 = arith.constant 0 : i32
    return %arg0, %arg1 : i32, i32
  }
  func.func @transform_1(%arg0: i32, %arg1: i32) -> (i32, i32) {
    %c0_i32 = arith.constant 0 : i32
    %c0_i32_0 = arith.constant 0 : i32
    return %arg1, %c0_i32 : i32, i32
  }
  func.func @transform_2(%arg0: i32, %arg1: i32) -> (i32, i32) {
    %c0_i32 = arith.constant 0 : i32
    %c0_i32_0 = arith.constant 0 : i32
    %c0_i32_1 = arith.constant 0 : i32
    return %c0_i32, %c0_i32_0 : i32, i32
  }
  func.func @transform_3(%arg0: i32, %arg1: i32) -> (i32, i32) {
    %c0_i32 = arith.constant 0 : i32
    %c0_i32_0 = arith.constant 0 : i32
    return %arg0, %c0_i32 : i32, i32
  }
}

module attributes {stable_mosaic.version = 11 : i64} {
  func.func @kernel(%arg0: i32, %arg1: i32, %arg2: memref<128x128xbf16, #tpu.memory_space<vmem>>, %arg3: memref<128x128xbf16, #tpu.memory_space<vmem>>, %arg4: memref<1x128xf32, #tpu.memory_space<vmem>>, %arg5: memref<128x128xf32, #tpu.memory_space<vmem>>, %arg6: memref<128x128xf32, #tpu.memory_space<vmem>>) attributes {dimension_semantics = [#tpu.dimension_semantics<parallel>, #tpu.dimension_semantics<arbitrary>], iteration_bounds = array<i64: 1, 1>, scalar_prefetch = 0 : i64, scratch_operands = 1 : i64, tpu.core_type = #tpu.core_type<tc>, window_params = [{transform_indices = @transform_0, window_bounds = array<i64: 128, 128>}, {transform_indices = @transform_1, window_bounds = array<i64: 128, 128>}, {pipeline_mode = #tpu.pipeline_mode<synchronous>, transform_indices = @transform_2, window_bounds = array<i64: 1, 128>}, {transform_indices = @transform_3, window_bounds = array<i64: 128, 128>}]} {
    %c0_i32 = arith.constant 0 : i32
    %0 = arith.cmpi eq, %arg1, %c0_i32 : i32
    %1 = arith.extui %0 : i1 to i32
    %c0_i32_0 = arith.constant 0 : i32
    %2 = arith.cmpi ne, %1, %c0_i32_0 : i32
    scf.if %2 {
      %cst_10 = arith.constant 0.000000e+00 : f32
      %12 = vector.broadcast %cst_10 : f32 to vector<128x128xf32>
      %c0_11 = arith.constant 0 : index
      %c0_12 = arith.constant 0 : index
      %13 = vector.load %arg6[%c0_11, %c0_12] : memref<128x128xf32, #tpu.memory_space<vmem>>, vector<128x128xf32>
      tpu.vector_store %arg6[%c0_11, %c0_12], %12 {strides = array<i32>} : memref<128x128xf32, #tpu.memory_space<vmem>>, vector<128x128xf32>,
    } else {
    }
    %c0 = arith.constant 0 : index
    %c0_1 = arith.constant 0 : index
    %3 = vector.load %arg6[%c0, %c0_1] : memref<128x128xf32, #tpu.memory_space<vmem>>, vector<128x128xf32>
    %c0_2 = arith.constant 0 : index
    %c0_3 = arith.constant 0 : index
    %4 = vector.load %arg2[%c0_2, %c0_3] : memref<128x128xbf16, #tpu.memory_space<vmem>>, vector<128x128xbf16>
    %c0_4 = arith.constant 0 : index
    %c0_5 = arith.constant 0 : index
    %5 = vector.load %arg3[%c0_4, %c0_5] : memref<128x128xbf16, #tpu.memory_space<vmem>>, vector<128x128xbf16>
    %cst = arith.constant dense<0.000000e+00> : vector<128x128xf32>
    %6 = tpu.matmul %4, %5, %cst {dimension_numbers = #tpu.dot_dimension_numbers<[1], [0], [0], [1], [0, 0, 1, 1], [], []>} : vector<128x128xbf16>, vector<128x128xbf16>, vector<128x128xf32> -> vector<128x128xf32>
    %7 = arith.addf %3, %6 : vector<128x128xf32>
    %c0_6 = arith.constant 0 : index
    %c0_7 = arith.constant 0 : index
    %8 = vector.load %arg6[%c0_6, %c0_7] : memref<128x128xf32, #tpu.memory_space<vmem>>, vector<128x128xf32>
    tpu.vector_store %arg6[%c0_6, %c0_7], %7 {strides = array<i32>} : memref<128x128xf32, #tpu.memory_space<vmem>>, vector<128x128xf32>,
    %c0_i32_8 = arith.constant 0 : i32
    %9 = arith.cmpi eq, %arg1, %c0_i32_8 : i32
    %10 = arith.extui %9 : i1 to i32
    %c0_i32_9 = arith.constant 0 : i32
    %11 = arith.cmpi ne, %10, %c0_i32_9 : i32
    scf.if %11 {
      %c0_10 = arith.constant 0 : index
      %c0_11 = arith.constant 0 : index
      %12 = vector.load %arg6[%c0_10, %c0_11] : memref<128x128xf32, #tpu.memory_space<vmem>>, vector<128x128xf32>
      %c0_12 = arith.constant 0 : index
      %c0_13 = arith.constant 0 : index
      %13 = vector.load %arg4[%c0_12, %c0_13] : memref<1x128xf32, #tpu.memory_space<vmem>>, vector<1x128xf32>
      %14 = vector.broadcast %13 : vector<1x128xf32> to vector<128x128xf32>
      %15 = arith.addf %12, %14 : vector<128x128xf32>
      %16 = tpu.iota {dimensions = array<i32: 1>} : vector<128x128xi32>
      %c7_i32 = arith.constant 7 : i32
      %17 = vector.broadcast %c7_i32 : i32 to vector<128x128xi32>
      %18 = arith.cmpi slt, %16, %17 : vector<128x128xi32>
      %cst_14 = arith.constant -1.000000e+30 : f32
      %19 = vector.broadcast %cst_14 : f32 to vector<128x128xf32>
      %20 = arith.select %18, %15, %19 : vector<128x128xi1>, vector<128x128xf32>
      %cst_15 = arith.constant dense<0xFF800000> : vector<128xf32>
      %21 = vector.multi_reduction <maximumf>, %20, %cst_15 [1] : vector<128x128xf32> to vector<128xf32>
      %22 = vector.shape_cast %21 : vector<128xf32> to vector<128x1xf32>
      %23 = vector.broadcast %22 : vector<128x1xf32> to vector<128x128xf32>
      %24 = arith.subf %20, %23 : vector<128x128xf32>
      %25 = math.exp %24 : vector<128x128xf32>
      %cst_16 = arith.constant dense<0.000000e+00> : vector<128xf32>
      %26 = vector.multi_reduction <add>, %25, %cst_16 [1] : vector<128x128xf32> to vector<128xf32>
      %27 = vector.shape_cast %26 : vector<128xf32> to vector<128x1xf32>
      %28 = math.log %27 : vector<128x1xf32>
      %29 = vector.broadcast %28 : vector<128x1xf32> to vector<128x128xf32>
      %30 = arith.subf %24, %29 : vector<128x128xf32>
      %c0_17 = arith.constant 0 : index
      %c0_18 = arith.constant 0 : index
      %31 = vector.load %arg5[%c0_17, %c0_18] : memref<128x128xf32, #tpu.memory_space<vmem>>, vector<128x128xf32>
      tpu.vector_store %arg5[%c0_17, %c0_18], %30 {strides = array<i32>} : memref<128x128xf32, #tpu.memory_space<vmem>>, vector<128x128xf32>,
    } else {
    }
    return
  }
  func.func @transform_0(%arg0: i32, %arg1: i32) -> (i32, i32) {
    %c0_i32 = arith.constant 0 : i32
    return %arg0, %arg1 : i32, i32
  }
  func.func @transform_1(%arg0: i32, %arg1: i32) -> (i32, i32) {
    %c0_i32 = arith.constant 0 : i32
    %c0_i32_0 = arith.constant 0 : i32
    return %arg1, %c0_i32 : i32, i32
  }
  func.func @transform_2(%arg0: i32, %arg1: i32) -> (i32, i32) {
    %c0_i32 = arith.constant 0 : i32
    %c0_i32_0 = arith.constant 0 : i32
    %c0_i32_1 = arith.constant 0 : i32
    return %c0_i32, %c0_i32_0 : i32, i32
  }
  func.func @transform_3(%arg0: i32, %arg1: i32) -> (i32, i32) {
    %c0_i32 = arith.constant 0 : i32
    %c0_i32_0 = arith.constant 0 : i32
    return %arg0, %c0_i32 : i32, i32
  }
}

</mosaic_0001>

<bundles_post_ra>
// kernel: gcn_forward.4
= control target key start
LH: loop header
LB: loop body
LE: loop exit
PB: predicated region body
PF: predicated region fallthrough
CT: control target
= control target key end

     0   :  { %s583_s1 = inlined_call_operand.vmem [shape: bf16[128,128], index: 1, kind: input, shape index: {}]   ;;  %s584_s0 = inlined_call_operand.vmem [shape: bf16[128,128], index: 0, kind: input, shape index: {}]   ;;  %s585_s2 = inlined_call_operand.vmem [shape: bf16[128,128], index: 2, kind: output, shape index: {}]  }
   0x1   :  { %v480_v0 = vld [vmem:[%s583_s1] sm:$0xff]   ;;  %v481_v1 = vld [vmem:[%s583_s1 + $0x8] sm:$0xff]   ;;  %v482_v2 = vld [vmem:[%s583_s1 + $0x10] sm:$0xff]  }
   0x2   :  { %432 = vmatprep.subr.bf16.mxu0 %v480_v0  ;;  %464 = vmatprep.subr.bf16.mxu1 %v480_v0  ;;  %v483_v3 = vld [vmem:[%s583_s1 + $0x18] sm:$0xff]   ;;  %v488_v4 = vld [vmem:[%s584_s0] sm:$0xff]   ;;  %v485_v7 = vld [vmem:[%s583_s1 + $0x28] sm:$0xff]  }
   0x3   :  { %433 = vmatpush3.bf16.msra.mxu0 %v480_v0  ;;  %472 = vmatpush3.bf16.msra.mxu1 %v480_v0  ;;  %v489_v5 = vld [vmem:[%s584_s0 + $0x20] sm:$0xff]   ;;  %v486_v8 = vld [vmem:[%s583_s1 + $0x30] sm:$0xff]   ;;  %v487_v9 = vld [vmem:[%s583_s1 + $0x38] sm:$0xff]  }
   0x4   :  { %434 = vmatprep.subr.bf16.mxu0 %v481_v1  ;;  %465 = vmatprep.subr.bf16.mxu1 %v481_v1  ;;  %v484_v6 = vld [vmem:[%s583_s1 + $0x20] sm:$0xff]   ;;  %v490_v10 = vld [vmem:[%s584_s0 + $0x8] sm:$0xff]   ;;  %v492_v12 = vld [vmem:[%s584_s0 + $0x10] sm:$0xff]  }
   0x5   :  { %448 = vmatprep.mubr.bf16.mxu0 %v488_v4  ;;  %456 = vmatprep.mubr.bf16.mxu1 %v489_v5  ;;  %v491_v11 = vld [vmem:[%s584_s0 + $0x28] sm:$0xff]   ;;  %v493_v13 = vld [vmem:[%s584_s0 + $0x30] sm:$0xff]   ;;  %v494_v14 = vld [vmem:[%s584_s0 + $0x18] sm:$0xff]  }
   0x6   :  { %v495_v15 = vld [vmem:[%s584_s0 + $0x38] sm:$0xff]  }
   0x7   :  { %435 = vmatpush3.bf16.msra.mxu0 %v481_v1  ;;  %473 = vmatpush3.bf16.msra.mxu1 %v481_v1 }
   0x8   :  { %436 = vmatprep.subr.bf16.mxu0 %v482_v2  ;;  %466 = vmatprep.subr.bf16.mxu1 %v482_v2 }
   0xb   :  { %437 = vmatpush3.bf16.msra.mxu0 %v482_v2  ;;  %474 = vmatpush3.bf16.msra.mxu1 %v482_v2 }
   0xc   :  { %438 = vmatprep.subr.bf16.mxu0 %v483_v3  ;;  %467 = vmatprep.subr.bf16.mxu1 %v483_v3 }
   0xf   :  { %439 = vmatpush3.bf16.msra.mxu0 %v483_v3  ;;  %475 = vmatpush3.bf16.msra.mxu1 %v483_v3 }
  0x10   :  { %440 = vmatprep.subr.bf16.mxu0 %v484_v6  ;;  %468 = vmatprep.subr.bf16.mxu1 %v484_v6 }
  0x13   :  { %441 = vmatpush3.bf16.msra.mxu0 %v484_v6  ;;  %476 = vmatpush3.bf16.msra.mxu1 %v484_v6 }
  0x14   :  { %442 = vmatprep.subr.bf16.mxu0 %v485_v7  ;;  %469 = vmatprep.subr.bf16.mxu1 %v485_v7 }
  0x17   :  { %443 = vmatpush3.bf16.msra.mxu0 %v485_v7  ;;  %477 = vmatpush3.bf16.msra.mxu1 %v485_v7 }
  0x18   :  { %444 = vmatprep.subr.bf16.mxu0 %v486_v8  ;;  %470 = vmatprep.subr.bf16.mxu1 %v486_v8 }
  0x1b   :  { %445 = vmatpush3.bf16.msra.mxu0 %v486_v8  ;;  %478 = vmatpush3.bf16.msra.mxu1 %v486_v8 }
  0x1c   :  { %446 = vmatprep.subr.bf16.mxu0 %v487_v9  ;;  %471 = vmatprep.subr.bf16.mxu1 %v487_v9 }
  0x1f   :  { %447 = vmatpush3.bf16.msra.mxu0 %v487_v9  ;;  %479 = vmatpush3.bf16.msra.mxu1 %v487_v9 }
  0x22   :  { %449 = vmatmul.mubr.bf16.vlgmr.msra.gmra.mrb[0].mxu0 %v490_v10  ;;  %457 = vmatmul.mubr.bf16.vlgmr.msra.gmra.mrb[0].mxu1 %v491_v11 }
  0x23   :  { %452 = vmatprep.mubr.bf16.mxu0 %v492_v12  ;;  %460 = vmatprep.mubr.bf16.mxu1 %v493_v13 }
  0x2a   :  { %453 = vmatmul.mubr.bf16.gmra.mrb[4].mxu0 %v494_v14  ;;  %461 = vmatmul.mubr.bf16.gmra.mrb[4].mxu1 %v495_v15 }
  0xf5   :  { %v450_v16 = vpop.f32.mrb[0].mxu0  ;;  %v458_v17 = vpop.f32.mrb[0].mxu1 }
  0xf6   :  { %v174_v18 = vpop.f32.mrb[1].mxu0  ;;  %v206_v19 = vpop.f32.mrb[1].mxu1 }
  0xf7   :  { %v451_v20 = vpop.f32.mrb[2].mxu0  ;;  %v459_v21 = vpop.f32.mrb[2].mxu1 }
  0xf8   :  { %v377_v22 = vpack.c.bf16 %v451_v20, %v450_v16  ;;  %v397_v23 = vpack.c.bf16 %v459_v21, %v458_v17  ;;  %v177_v24 = vpop.f32.mrb[3].mxu0  ;;  %v209_v25 = vpop.f32.mrb[3].mxu1 }
  0xf9   :  { %v372_v26 = vpack.c.bf16 %v177_v24, %v174_v18  ;;  %v392_v27 = vpack.c.bf16 %v209_v25, %v206_v19 }
  0xfa   :  { %409 = vst [vmem:[%s585_s2 + $0x8] sm:$0xff] %v377_v22   ;;  %413 = vst [vmem:[%s585_s2 + $0x28] sm:$0xff] %v397_v23  }
  0xfb   :  { %373 = vst [vmem:[%s585_s2] sm:$0xff] %v372_v26   ;;  %412 = vst [vmem:[%s585_s2 + $0x20] sm:$0xff] %v392_v27  }
  0xfd   :  { %v454_v28 = vpop.f32.mrb[4].mxu0  ;;  %v462_v29 = vpop.f32.mrb[4].mxu1 }
  0xfe   :  { %v190_v30 = vpop.f32.mrb[5].mxu0  ;;  %v222_v31 = vpop.f32.mrb[5].mxu1 }
  0xff   :  { %v455_v32 = vpop.f32.mrb[6].mxu0  ;;  %v463_v33 = vpop.f32.mrb[6].mxu1 }
 0x100   :  { %v387_v34 = vpack.c.bf16 %v455_v32, %v454_v28  ;;  %v407_v35 = vpack.c.bf16 %v463_v33, %v462_v29  ;;  %v193_v36 = vpop.f32.mrb[7].mxu0  ;;  %v225_v37 = vpop.f32.mrb[7].mxu1 }
 0x101   :  { %v382_v38 = vpack.c.bf16 %v193_v36, %v190_v30  ;;  %v402_v39 = vpack.c.bf16 %v225_v37, %v222_v31 }
 0x102   :  { %411 = vst [vmem:[%s585_s2 + $0x18] sm:$0xff] %v387_v34   ;;  %415 = vst [vmem:[%s585_s2 + $0x38] sm:$0xff] %v407_v35  }
 0x103   :  { %410 = vst [vmem:[%s585_s2 + $0x10] sm:$0xff] %v382_v38   ;;  %414 = vst [vmem:[%s585_s2 + $0x30] sm:$0xff] %v402_v39  }

// kernel: gcn_forward.5
= control target key start
LH: loop header
LB: loop body
LE: loop exit
PB: predicated region body
PF: predicated region fallthrough
CT: control target
= control target key end

     0   :  { %s721_s1 = inlined_call_operand.vmem [shape: bf16[128,128], index: 1, kind: input, shape index: {}]   ;;  %s722_s0 = inlined_call_operand.vmem [shape: bf16[128,128], index: 0, kind: input, shape index: {}]   ;;  %s723_s2 = inlined_call_operand.vmem [shape: f32[1,128], index: 2, kind: input, shape index: {}]   ;;  %s724_s3 = inlined_call_operand.vmem [shape: bf16[128,128], index: 3, kind: output, shape index: {}]  }
   0x1   :  { %v610_v0 = vld [vmem:[%s721_s1] sm:$0xff]   ;;  %v611_v1 = vld [vmem:[%s721_s1 + $0x8] sm:$0xff]   ;;  %v612_v2 = vld [vmem:[%s721_s1 + $0x10] sm:$0xff]  }
   0x2   :  { %562 = vmatprep.subr.bf16.mxu0 %v610_v0  ;;  %594 = vmatprep.subr.bf16.mxu1 %v610_v0  ;;  %v613_v3 = vld [vmem:[%s721_s1 + $0x18] sm:$0xff]   ;;  %v618_v4 = vld [vmem:[%s722_s0] sm:$0xff]   ;;  %v615_v7 = vld [vmem:[%s721_s1 + $0x28] sm:$0xff]  }
   0x3   :  { %563 = vmatpush3.bf16.msra.mxu0 %v610_v0  ;;  %602 = vmatpush3.bf16.msra.mxu1 %v610_v0  ;;  %v619_v5 = vld [vmem:[%s722_s0 + $0x20] sm:$0xff]   ;;  %v616_v8 = vld [vmem:[%s721_s1 + $0x30] sm:$0xff]   ;;  %v617_v9 = vld [vmem:[%s721_s1 + $0x38] sm:$0xff]  }
   0x4   :  { %564 = vmatprep.subr.bf16.mxu0 %v611_v1  ;;  %595 = vmatprep.subr.bf16.mxu1 %v611_v1  ;;  %v614_v6 = vld [vmem:[%s721_s1 + $0x20] sm:$0xff]   ;;  %v620_v10 = vld [vmem:[%s722_s0 + $0x8] sm:$0xff]   ;;  %v622_v12 = vld [vmem:[%s722_s0 + $0x10] sm:$0xff]  }
   0x5   :  { %578 = vmatprep.mubr.bf16.mxu0 %v618_v4  ;;  %586 = vmatprep.mubr.bf16.mxu1 %v619_v5  ;;  %v621_v11 = vld [vmem:[%s722_s0 + $0x28] sm:$0xff]   ;;  %v623_v13 = vld [vmem:[%s722_s0 + $0x30] sm:$0xff]   ;;  %v624_v14 = vld [vmem:[%s722_s0 + $0x18] sm:$0xff]  }
   0x6   :  { %v625_v15 = vld [vmem:[%s722_s0 + $0x38] sm:$0xff]   ;;  %v466_v16 = vld [vmem:[%s723_s2] ss:$0 sm:$0xff] }
   0x7   :  { %565 = vmatpush3.bf16.msra.mxu0 %v611_v1  ;;  %603 = vmatpush3.bf16.msra.mxu1 %v611_v1 }
   0x8   :  { %566 = vmatprep.subr.bf16.mxu0 %v612_v2  ;;  %596 = vmatprep.subr.bf16.mxu1 %v612_v2 }
   0xb   :  { %567 = vmatpush3.bf16.msra.mxu0 %v612_v2  ;;  %604 = vmatpush3.bf16.msra.mxu1 %v612_v2 }
   0xc   :  { %568 = vmatprep.subr.bf16.mxu0 %v613_v3  ;;  %597 = vmatprep.subr.bf16.mxu1 %v613_v3 }
   0xf   :  { %569 = vmatpush3.bf16.msra.mxu0 %v613_v3  ;;  %605 = vmatpush3.bf16.msra.mxu1 %v613_v3 }
  0x10   :  { %570 = vmatprep.subr.bf16.mxu0 %v614_v6  ;;  %598 = vmatprep.subr.bf16.mxu1 %v614_v6 }
  0x13   :  { %571 = vmatpush3.bf16.msra.mxu0 %v614_v6  ;;  %606 = vmatpush3.bf16.msra.mxu1 %v614_v6 }
  0x14   :  { %572 = vmatprep.subr.bf16.mxu0 %v615_v7  ;;  %599 = vmatprep.subr.bf16.mxu1 %v615_v7 }
  0x17   :  { %573 = vmatpush3.bf16.msra.mxu0 %v615_v7  ;;  %607 = vmatpush3.bf16.msra.mxu1 %v615_v7 }
  0x18   :  { %574 = vmatprep.subr.bf16.mxu0 %v616_v8  ;;  %600 = vmatprep.subr.bf16.mxu1 %v616_v8 }
  0x1b   :  { %575 = vmatpush3.bf16.msra.mxu0 %v616_v8  ;;  %608 = vmatpush3.bf16.msra.mxu1 %v616_v8 }
  0x1c   :  { %576 = vmatprep.subr.bf16.mxu0 %v617_v9  ;;  %601 = vmatprep.subr.bf16.mxu1 %v617_v9 }
  0x1f   :  { %577 = vmatpush3.bf16.msra.mxu0 %v617_v9  ;;  %609 = vmatpush3.bf16.msra.mxu1 %v617_v9 }
  0x22   :  { %579 = vmatmul.mubr.bf16.vlgmr.msra.gmra.mrb[0].mxu0 %v620_v10  ;;  %587 = vmatmul.mubr.bf16.vlgmr.msra.gmra.mrb[0].mxu1 %v621_v11 }
  0x23   :  { %582 = vmatprep.mubr.bf16.mxu0 %v622_v12  ;;  %590 = vmatprep.mubr.bf16.mxu1 %v623_v13 }
  0x2a   :  { %583 = vmatmul.mubr.bf16.gmra.mrb[4].mxu0 %v624_v14  ;;  %591 = vmatmul.mubr.bf16.gmra.mrb[4].mxu1 %v625_v15 }
  0xf5   :  { %v580_v17 = vpop.f32.mrb[0].mxu0  ;;  %v588_v18 = vpop.f32.mrb[0].mxu1 }
  0xf6   :  { %v336_v19 = vadd.f32 %v580_v17, %v466_v16  ;;  %v344_v20 = vadd.f32 %v588_v18, %v466_v16  ;;  %v213_v21 = vpop.f32.mrb[1].mxu0  ;;  %v245_v22 = vpop.f32.mrb[1].mxu1 }
  0xf7   :  { %v334_v23 = vadd.f32 %v466_v16, %v213_v21  ;;  %v342_v24 = vadd.f32 %v466_v16, %v245_v22  ;;  %v581_v25 = vpop.f32.mrb[2].mxu0  ;;  %v589_v26 = vpop.f32.mrb[2].mxu1 }
  0xf8   :  { %v337_v27 = vadd.f32 %v581_v25, %v466_v16  ;;  %v345_v28 = vadd.f32 %v589_v26, %v466_v16  ;;  %v216_v29 = vpop.f32.mrb[3].mxu0  ;;  %v248_v30 = vpop.f32.mrb[3].mxu1  ;;  %v352_v33 = vmax.f32 %v336_v19, 0.0  ;;  %v360_v34 = vmax.f32 %v344_v20, 0.0 }
  0xf9   :  { %v335_v31 = vadd.f32 %v466_v16, %v216_v29  ;;  %v343_v32 = vadd.f32 %v466_v16, %v248_v30  ;;  %v350_v37 = vmax.f32 %v334_v23, 0.0  ;;  %v358_v38 = vmax.f32 %v342_v24, 0.0 }
  0xfa   :  { %v353_v35 = vmax.f32 %v337_v27, 0.0  ;;  %v361_v36 = vmax.f32 %v345_v28, 0.0 }
  0xfb   :  { %v351_v39 = vmax.f32 %v335_v31, 0.0  ;;  %v359_v40 = vmax.f32 %v343_v32, 0.0 }
  0xfc   :  { %v507_v41 = vpack.c.bf16 %v353_v35, %v352_v33  ;;  %v527_v42 = vpack.c.bf16 %v361_v36, %v360_v34 }
  0xfd   :  { %v502_v43 = vpack.c.bf16 %v351_v39, %v350_v37  ;;  %v522_v44 = vpack.c.bf16 %v359_v40, %v358_v38  ;;  %v584_v45 = vpop.f32.mrb[4].mxu0  ;;  %v592_v46 = vpop.f32.mrb[4].mxu1 }
  0xfe   :  { %539 = vst [vmem:[%s724_s3 + $0x8] sm:$0xff] %v507_v41   ;;  %543 = vst [vmem:[%s724_s3 + $0x28] sm:$0xff] %v527_v42   ;;  %v340_v47 = vadd.f32 %v584_v45, %v466_v16  ;;  %v348_v48 = vadd.f32 %v592_v46, %v466_v16  ;;  %v229_v49 = vpop.f32.mrb[5].mxu0  ;;  %v261_v50 = vpop.f32.mrb[5].mxu1 }
  0xff   :  { %503 = vst [vmem:[%s724_s3] sm:$0xff] %v502_v43   ;;  %542 = vst [vmem:[%s724_s3 + $0x20] sm:$0xff] %v522_v44   ;;  %v338_v51 = vadd.f32 %v466_v16, %v229_v49  ;;  %v346_v52 = vadd.f32 %v466_v16, %v261_v50  ;;  %v585_v53 = vpop.f32.mrb[6].mxu0  ;;  %v593_v54 = vpop.f32.mrb[6].mxu1 }
 0x100   :  { %v341_v55 = vadd.f32 %v585_v53, %v466_v16  ;;  %v349_v56 = vadd.f32 %v593_v54, %v466_v16  ;;  %v232_v57 = vpop.f32.mrb[7].mxu0  ;;  %v264_v58 = vpop.f32.mrb[7].mxu1  ;;  %v356_v61 = vmax.f32 %v340_v47, 0.0  ;;  %v364_v62 = vmax.f32 %v348_v48, 0.0 }
 0x101   :  { %v339_v59 = vadd.f32 %v466_v16, %v232_v57  ;;  %v347_v60 = vadd.f32 %v466_v16, %v264_v58  ;;  %v354_v1 = vmax.f32 %v338_v51, 0.0  ;;  %v362_v2 = vmax.f32 %v346_v52, 0.0 }
 0x102   :  { %v357_v63 = vmax.f32 %v341_v55, 0.0  ;;  %v365_v0 = vmax.f32 %v349_v56, 0.0 }
 0x103   :  { %v355_v3 = vmax.f32 %v339_v59, 0.0  ;;  %v363_v4 = vmax.f32 %v347_v60, 0.0 }
 0x104   :  { %v517_v5 = vpack.c.bf16 %v357_v63, %v356_v61  ;;  %v537_v6 = vpack.c.bf16 %v365_v0, %v364_v62 }
 0x105   :  { %v512_v7 = vpack.c.bf16 %v355_v3, %v354_v1  ;;  %v532_v8 = vpack.c.bf16 %v363_v4, %v362_v2 }
 0x106   :  { %541 = vst [vmem:[%s724_s3 + $0x18] sm:$0xff] %v517_v5   ;;  %545 = vst [vmem:[%s724_s3 + $0x38] sm:$0xff] %v537_v6  }
 0x107   :  { %540 = vst [vmem:[%s724_s3 + $0x10] sm:$0xff] %v512_v7   ;;  %544 = vst [vmem:[%s724_s3 + $0x30] sm:$0xff] %v532_v8  }

// kernel: gcn_forward.7
= control target key start
LH: loop header
LB: loop body
LE: loop exit
PB: predicated region body
PF: predicated region fallthrough
CT: control target
= control target key end

     0   :  { %v350_v16 = vlaneseq  ;;  %s944_s1 = inlined_call_operand.vmem [shape: bf16[128,128], index: 1, kind: input, shape index: {}]   ;;  %s945_s0 = inlined_call_operand.vmem [shape: bf16[128,128], index: 0, kind: input, shape index: {}]   ;;  %s946_s2 = inlined_call_operand.vmem [shape: f32[1,128], index: 2, kind: input, shape index: {}]   ;;  %s947_s3 = inlined_call_operand.vmem [shape: f32[128,128], index: 3, kind: output, shape index: {}]  }
   0x1   :  { %v630_v0 = vld [vmem:[%s944_s1] sm:$0xff]   ;;  %v631_v1 = vld [vmem:[%s944_s1 + $0x8] sm:$0xff]   ;;  %v632_v2 = vld [vmem:[%s944_s1 + $0x10] sm:$0xff]  }
   0x2   :  { %582 = vmatprep.subr.bf16.mxu0 %v630_v0  ;;  %614 = vmatprep.subr.bf16.mxu1 %v630_v0  ;;  %v633_v3 = vld [vmem:[%s944_s1 + $0x18] sm:$0xff]   ;;  %v638_v4 = vld [vmem:[%s945_s0] sm:$0xff]   ;;  %v635_v7 = vld [vmem:[%s944_s1 + $0x28] sm:$0xff]   ;;  %v778_v17 = vand.u32 127, %v350_v16 }
   0x3   :  { %583 = vmatpush3.bf16.msra.mxu0 %v630_v0  ;;  %622 = vmatpush3.bf16.msra.mxu1 %v630_v0  ;;  %v639_v5 = vld [vmem:[%s945_s0 + $0x20] sm:$0xff]   ;;  %v636_v8 = vld [vmem:[%s944_s1 + $0x30] sm:$0xff]   ;;  %v637_v9 = vld [vmem:[%s944_s1 + $0x38] sm:$0xff]  }
   0x4   :  { %584 = vmatprep.subr.bf16.mxu0 %v631_v1  ;;  %615 = vmatprep.subr.bf16.mxu1 %v631_v1  ;;  %v634_v6 = vld [vmem:[%s944_s1 + $0x20] sm:$0xff]   ;;  %v640_v10 = vld [vmem:[%s945_s0 + $0x8] sm:$0xff]   ;;  %v642_v12 = vld [vmem:[%s945_s0 + $0x10] sm:$0xff]   ;;  %vm352_vm0 = vcmp.lt.s32.totalorder %v778_v17, 7 }
   0x5   :  { %598 = vmatprep.mubr.bf16.mxu0 %v638_v4  ;;  %606 = vmatprep.mubr.bf16.mxu1 %v639_v5  ;;  %v641_v11 = vld [vmem:[%s945_s0 + $0x28] sm:$0xff]   ;;  %v644_v13 = vld [vmem:[%s945_s0 + $0x30] sm:$0xff]   ;;  %v643_v14 = vld [vmem:[%s945_s0 + $0x18] sm:$0xff]  }
   0x6   :  { %v645_v15 = vld [vmem:[%s945_s0 + $0x38] sm:$0xff]   ;;  %v565_v18 = vld [vmem:[%s946_s2] ss:$0 sm:$0xff] }
   0x7   :  { %585 = vmatpush3.bf16.msra.mxu0 %v631_v1  ;;  %623 = vmatpush3.bf16.msra.mxu1 %v631_v1 }
   0x8   :  { %586 = vmatprep.subr.bf16.mxu0 %v632_v2  ;;  %616 = vmatprep.subr.bf16.mxu1 %v632_v2 }
   0xb   :  { %587 = vmatpush3.bf16.msra.mxu0 %v632_v2  ;;  %624 = vmatpush3.bf16.msra.mxu1 %v632_v2 }
   0xc   :  { %588 = vmatprep.subr.bf16.mxu0 %v633_v3  ;;  %617 = vmatprep.subr.bf16.mxu1 %v633_v3 }
   0xf   :  { %589 = vmatpush3.bf16.msra.mxu0 %v633_v3  ;;  %625 = vmatpush3.bf16.msra.mxu1 %v633_v3 }
  0x10   :  { %590 = vmatprep.subr.bf16.mxu0 %v634_v6  ;;  %618 = vmatprep.subr.bf16.mxu1 %v634_v6 }
  0x13   :  { %591 = vmatpush3.bf16.msra.mxu0 %v634_v6  ;;  %626 = vmatpush3.bf16.msra.mxu1 %v634_v6 }
  0x14   :  { %592 = vmatprep.subr.bf16.mxu0 %v635_v7  ;;  %619 = vmatprep.subr.bf16.mxu1 %v635_v7 }
  0x17   :  { %593 = vmatpush3.bf16.msra.mxu0 %v635_v7  ;;  %627 = vmatpush3.bf16.msra.mxu1 %v635_v7 }
  0x18   :  { %594 = vmatprep.subr.bf16.mxu0 %v636_v8  ;;  %620 = vmatprep.subr.bf16.mxu1 %v636_v8 }
  0x1b   :  { %595 = vmatpush3.bf16.msra.mxu0 %v636_v8  ;;  %628 = vmatpush3.bf16.msra.mxu1 %v636_v8 }
  0x1c   :  { %596 = vmatprep.subr.bf16.mxu0 %v637_v9  ;;  %621 = vmatprep.subr.bf16.mxu1 %v637_v9 }
  0x1f   :  { %597 = vmatpush3.bf16.msra.mxu0 %v637_v9  ;;  %629 = vmatpush3.bf16.msra.mxu1 %v637_v9 }
  0x22   :  { %599 = vmatmul.mubr.bf16.vlgmr.msra.gmra.mrb[0].mxu0 %v640_v10  ;;  %607 = vmatmul.mubr.bf16.vlgmr.msra.gmra.mrb[0].mxu1 %v641_v11 }
  0x23   :  { %602 = vmatprep.mubr.bf16.mxu0 %v642_v12  ;;  %610 = vmatprep.mubr.bf16.mxu1 %v644_v13 }
  0x2a   :  { %603 = vmatmul.mubr.bf16.gmra.mrb[4].mxu0 %v643_v14  ;;  %611 = vmatmul.mubr.bf16.gmra.mrb[4].mxu1 %v645_v15 }
  0xf5   :  { %v600_v19 = vpop.f32.mrb[0].mxu0  ;;  %v608_v20 = vpop.f32.mrb[0].mxu1 }
  0xf6   :  { %v336_v21 = vadd.f32 %v600_v19, %v565_v18  ;;  %v344_v22 = vadd.f32 %v608_v20, %v565_v18  ;;  %v213_v23 = vpop.f32.mrb[1].mxu0  ;;  %v245_v24 = vpop.f32.mrb[1].mxu1 }
  0xf7   :  { %v601_v25 = vpop.f32.mrb[2].mxu0  ;;  %v609_v26 = vpop.f32.mrb[2].mxu1  ;;  %v334_v27 = vadd.f32 %v565_v18, %v213_v23  ;;  %v342_v33 = vadd.f32 %v565_v18, %v245_v24 }
  0xf8   :  { %v337_v28 = vadd.f32 %v601_v25, %v565_v18  ;;  %v216_v29 = vpop.f32.mrb[3].mxu0  ;;  %v248_v30 = vpop.f32.mrb[3].mxu1  ;;  %v363_v31 = vsel %vm352_vm0, %v344_v22, -1e+30  ;;  %v355_v32 = vsel %vm352_vm0, %v336_v21, -1e+30  ;;  %v345_v34 = vadd.f32 %v609_v26, %v565_v18 }
  0xf9   :  { %389 = vmax.xlane.f32.xlu0 %v363_v31  ;;  %373 = vmax.xlane.f32.xlu1 %v355_v32  ;;  %v353_v35 = vsel %vm352_vm0, %v334_v27, -1e+30  ;;  %v335_v43 = vadd.f32 %v565_v18, %v216_v29  ;;  %v343_v44 = vadd.f32 %v565_v18, %v248_v30  ;;  %v361_v45 = vsel %vm352_vm0, %v342_v33, -1e+30 }
  0xfa   :  { %v356_v36 = vsel %vm352_vm0, %v337_v28, -1e+30  ;;  %v364_v46 = vsel %vm352_vm0, %v345_v34, -1e+30 }
  0xfb   :  { %v362_v51 = vsel %vm352_vm0, %v343_v44, -1e+30  ;;  %v354_v52 = vsel %vm352_vm0, %v335_v43, -1e+30 }
  0xfd   :  { %369 = vmax.xlane.f32.xlu0 %v353_v35  ;;  %375 = vmax.xlane.f32.xlu1 %v356_v36  ;;  %v604_v37 = vpop.f32.mrb[4].mxu0  ;;  %v612_v38 = vpop.f32.mrb[4].mxu1 }
  0xfe   :  { %v229_v39 = vpop.f32.mrb[5].mxu0  ;;  %v261_v40 = vpop.f32.mrb[5].mxu1  ;;  %v340_v49 = vadd.f32 %v604_v37, %v565_v18  ;;  %v348_v63 = vadd.f32 %v612_v38, %v565_v18 }
  0xff   :  { %v605_v41 = vpop.f32.mrb[6].mxu0  ;;  %v613_v42 = vpop.f32.mrb[6].mxu1  ;;  %v338_v55 = vadd.f32 %v565_v18, %v229_v39  ;;  %v346_v57 = vadd.f32 %v565_v18, %v261_v40 }
 0x100   :  { %v232_v47 = vpop.f32.mrb[7].mxu0  ;;  %v264_v48 = vpop.f32.mrb[7].mxu1  ;;  %v341_v50 = vadd.f32 %v605_v41, %v565_v18  ;;  %v359_v53 = vsel %vm352_vm0, %v340_v49, -1e+30  ;;  %v349_v0 = vadd.f32 %v613_v42, %v565_v18  ;;  %v820_v1 = vsel %vm352_vm0, %v348_v63, -1e+30 }
 0x101   :  { %385 = vmax.xlane.f32.xlu0 %v361_v45  ;;  %391 = vmax.xlane.f32.xlu1 %v364_v46  ;;  %v339_v56 = vadd.f32 %v565_v18, %v232_v47  ;;  %v347_v58 = vadd.f32 %v565_v18, %v264_v48  ;;  %v357_v59 = vsel %vm352_vm0, %v338_v55, -1e+30  ;;  %v810_v61 = vsel %vm352_vm0, %v346_v57, -1e+30 }
 0x102   :  { %v360_v54 = vsel %vm352_vm0, %v341_v50, -1e+30  ;;  %v824_v2 = vsel %vm352_vm0, %v349_v0, -1e+30 }
 0x103   :  { %v358_v60 = vsel %vm352_vm0, %v339_v56, -1e+30  ;;  %v814_v62 = vsel %vm352_vm0, %v347_v58, -1e+30 }
 0x105   :  { %387 = vmax.xlane.f32.xlu1 %v362_v51  ;;  %371 = vmax.xlane.f32.xlu0 %v354_v52 }
 0x109   :  { %381 = vmax.xlane.f32.xlu0 %v359_v53  ;;  %383 = vmax.xlane.f32.xlu1 %v360_v54 }
 0x10d   :  { %377 = vmax.xlane.f32.xlu0 %v357_v59  ;;  %379 = vmax.xlane.f32.xlu1 %v358_v60 }
 0x111   :  { %393 = vmax.xlane.f32.xlu0 %v810_v61  ;;  %395 = vmax.xlane.f32.xlu1 %v814_v62 }
 0x115   :  { %397 = vmax.xlane.f32.xlu0 %v820_v1  ;;  %399 = vmax.xlane.f32.xlu1 %v824_v2 }
 0x186   :  { %v390_v3 = vpop.xlane.xlu0 %389  ;;  %v374_v4 = vpop.xlane.xlu1 %373 }
 0x187   :  { %v828_v5 = vsub.f32 %v363_v31, %v390_v3  ;;  %v830_v6 = vsub.f32 %v355_v32, %v374_v4 }
 0x189   :  { %v421_v7 = vmul.f32 1.442695, %v830_v6  ;;  %v437_v10 = vmul.f32 1.442695, %v828_v5 }
 0x18a   :  { %v370_v8 = vpop.xlane.xlu0 %369  ;;  %v376_v9 = vpop.xlane.xlu1 %375 }
 0x18b   :  { %v834_v11 = vsub.f32 %v353_v35, %v370_v8  ;;  %v836_v12 = vsub.f32 %v356_v36, %v376_v9  ;;  %646 = vpow2.f32 %v421_v7 }
 0x18c   :  { %648 = vpow2.f32 %v437_v10 }
 0x18d   :  { %v423_v13 = vmul.f32 1.442695, %v836_v12  ;;  %v417_v16 = vmul.f32 1.442695, %v834_v11 }
 0x18e   :  { %v386_v14 = vpop.xlane.xlu0 %385  ;;  %v392_v15 = vpop.xlane.xlu1 %391 }
 0x18f   :  { %v840_v17 = vsub.f32 %v361_v45, %v386_v14  ;;  %v842_v18 = vsub.f32 %v364_v46, %v392_v15  ;;  %650 = vpow2.f32 %v423_v13 }
 0x190   :  { %652 = vpow2.f32 %v417_v16 }
 0x191   :  { %v439_v19 = vmul.f32 1.442695, %v842_v18  ;;  %v433_v22 = vmul.f32 1.442695, %v840_v17 }
 0x192   :  { %v388_v20 = vpop.xlane.xlu1 %387  ;;  %v372_v21 = vpop.xlane.xlu0 %371 }
 0x193   :  { %v846_v23 = vsub.f32 %v354_v52, %v372_v21  ;;  %654 = vpow2.f32 %v439_v19  ;;  %v848_v24 = vsub.f32 %v362_v51, %v388_v20 }
 0x194   :  { %656 = vpow2.f32 %v433_v22 }
 0x195   :  { %v419_v25 = vmul.f32 1.442695, %v846_v23  ;;  %v647_v26 = vpop.eup %646  ;;  %v435_v30 = vmul.f32 1.442695, %v848_v24 }
 0x196   :  { %v382_v27 = vpop.xlane.xlu0 %381  ;;  %v384_v28 = vpop.xlane.xlu1 %383  ;;  %453 = vadd.xlane.f32.xlu0 %v647_v26 }
 0x197   :  { %v851_v29 = vsub.f32 %v359_v53, %v382_v27  ;;  %658 = vpow2.f32 %v419_v25  ;;  %v854_v31 = vsub.f32 %v360_v54, %v384_v28  ;;  %v649_v32 = vpop.eup %648 }
 0x199   :  { %v429_v33 = vmul.f32 1.442695, %v851_v29  ;;  %v651_v34 = vpop.eup %650  ;;  %v431_v38 = vmul.f32 1.442695, %v854_v31 }
 0x19a   :  { %v378_v35 = vpop.xlane.xlu0 %377  ;;  %v380_v36 = vpop.xlane.xlu1 %379  ;;  %469 = vadd.xlane.f32.xlu0 %v649_v32  ;;  %455 = vadd.xlane.f32.xlu1 %v651_v34 }
 0x19b   :  { %660 = vpow2.f32 %v429_v33  ;;  %v857_v37 = vsub.f32 %v357_v59, %v378_v35  ;;  %v860_v39 = vsub.f32 %v358_v60, %v380_v36  ;;  %v653_v40 = vpop.eup %652 }
 0x19c   :  { %662 = vpow2.f32 %v435_v30 }
 0x19d   :  { %v425_v41 = vmul.f32 1.442695, %v857_v37  ;;  %v655_v42 = vpop.eup %654  ;;  %v427_v46 = vmul.f32 1.442695, %v860_v39 }
 0x19e   :  { %v394_v43 = vpop.xlane.xlu0 %393  ;;  %v396_v44 = vpop.xlane.xlu1 %395  ;;  %449 = vadd.xlane.f32.xlu0 %v653_v40  ;;  %471 = vadd.xlane.f32.xlu1 %v655_v42 }
 0x19f   :  { %664 = vpow2.f32 %v425_v41  ;;  %v864_v45 = vsub.f32 %v810_v61, %v394_v43  ;;  %v868_v47 = vsub.f32 %v814_v62, %v396_v44  ;;  %v657_v48 = vpop.eup %656 }
 0x1a0   :  { %666 = vpow2.f32 %v431_v38 }
 0x1a1   :  { %v441_v49 = vmul.f32 1.442695, %v864_v45  ;;  %v659_v50 = vpop.eup %658  ;;  %v443_v54 = vmul.f32 1.442695, %v868_v47 }
 0x1a2   :  { %v398_v51 = vpop.xlane.xlu0 %397  ;;  %v400_v52 = vpop.xlane.xlu1 %399  ;;  %465 = vadd.xlane.f32.xlu0 %v657_v48  ;;  %451 = vadd.xlane.f32.xlu1 %v659_v50 }
 0x1a3   :  { %668 = vpow2.f32 %v441_v49  ;;  %v872_v53 = vsub.f32 %v820_v1, %v398_v51  ;;  %v876_v55 = vsub.f32 %v824_v2, %v400_v52 }
 0x1a4   :  { %670 = vpow2.f32 %v427_v46 }
 0x1a5   :  { %v661_v56 = vpop.eup %660  ;;  %v445_v57 = vmul.f32 1.442695, %v872_v53  ;;  %v447_v59 = vmul.f32 1.442695, %v876_v55 }
 0x1a6   :  { %v663_v58 = vpop.eup %662  ;;  %461 = vadd.xlane.f32.xlu0 %v661_v56 }
 0x1a7   :  { %672 = vpow2.f32 %v445_v57  ;;  %467 = vadd.xlane.f32.xlu1 %v663_v58 }
 0x1a8   :  { %674 = vpow2.f32 %v443_v54 }
 0x1a9   :  { %v665_v60 = vpop.eup %664  ;;  %676 = vpow2.f32 %v447_v59 }
 0x1aa   :  { %v667_v61 = vpop.eup %666  ;;  %457 = vadd.xlane.f32.xlu0 %v665_v60 }
 0x1ab   :  { %463 = vadd.xlane.f32.xlu1 %v667_v61 }
 0x1ad   :  { %v669_v62 = vpop.eup %668 }
 0x1ae   :  { %v671_v63 = vpop.eup %670  ;;  %473 = vadd.xlane.f32.xlu0 %v669_v62 }
 0x1af   :  { %459 = vadd.xlane.f32.xlu1 %v671_v63 }
 0x1b1   :  { %v673_v0 = vpop.eup %672 }
 0x1b2   :  { %v675_v1 = vpop.eup %674  ;;  %477 = vadd.xlane.f32.xlu0 %v673_v0 }
 0x1b3   :  { %475 = vadd.xlane.f32.xlu1 %v675_v1  ;;  %v677_v2 = vpop.eup %676 }
 0x1b7   :  { %479 = vadd.xlane.f32.xlu1 %v677_v2 }
 0x223   :  { %v454_v3 = vpop.xlane.xlu0 %453 }
 0x224   :  { %678 = vlog2.f32 %v454_v3 }
 0x227   :  { %v470_v4 = vpop.xlane.xlu0 %469  ;;  %v456_v7 = vpop.xlane.xlu1 %455 }
 0x228   :  { %680 = vlog2.f32 %v470_v4 }
 0x229   :  { %682 = vlog2.f32 %v456_v7 }
 0x22b   :  { %v450_v8 = vpop.xlane.xlu0 %449  ;;  %v472_v9 = vpop.xlane.xlu1 %471 }
 0x22c   :  { %684 = vlog2.f32 %v450_v8 }
 0x22d   :  { %686 = vlog2.f32 %v472_v9 }
 0x22e   :  { %v679_v10 = vpop.eup %678 }
 0x22f   :  { %v486_v13 = vmul.f32 0.6931472, %v679_v10  ;;  %v466_v14 = vpop.xlane.xlu0 %465  ;;  %v452_v15 = vpop.xlane.xlu1 %451 }
 0x230   :  { %688 = vlog2.f32 %v466_v14 }
 0x231   :  { %v515_v16 = vsub.f32 %v830_v6, %v486_v13  ;;  %690 = vlog2.f32 %v452_v15 }
 0x232   :  { %v681_v19 = vpop.eup %680 }
 0x233   :  { %v683_v20 = vpop.eup %682  ;;  %531 = vst [vmem:[%s947_s3 + $0x10] sm:$0xff] %v515_v16  ;;  %v502_v21 = vmul.f32 0.6931472, %v681_v19  ;;  %v462_v22 = vpop.xlane.xlu0 %461 }
 0x234   :  { %v468_v25 = vpop.xlane.xlu1 %467  ;;  %v488_v26 = vmul.f32 0.6931472, %v683_v20  ;;  %692 = vlog2.f32 %v462_v22 }
 0x235   :  { %v523_v27 = vsub.f32 %v828_v5, %v502_v21  ;;  %694 = vlog2.f32 %v468_v25 }
 0x236   :  { %v685_v28 = vpop.eup %684  ;;  %v516_v30 = vsub.f32 %v836_v12, %v488_v26 }
 0x237   :  { %v687_v32 = vpop.eup %686  ;;  %539 = vst [vmem:[%s947_s3 + $0x50] sm:$0xff] %v523_v27  ;;  %v482_v6 = vmul.f32 0.6931472, %v685_v28  ;;  %v458_v33 = vpop.xlane.xlu0 %457 }
 0x238   :  { %v464_v34 = vpop.xlane.xlu1 %463  ;;  %532 = vst [vmem:[%s947_s3 + $0x18] sm:$0xff] %v516_v30  ;;  %v504_v35 = vmul.f32 0.6931472, %v687_v32  ;;  %696 = vlog2.f32 %v458_v33 }
 0x239   :  { %v513_v5 = vsub.f32 %v834_v11, %v482_v6  ;;  %698 = vlog2.f32 %v464_v34 }
 0x23a   :  { %v689_v36 = vpop.eup %688  ;;  %v524_v12 = vsub.f32 %v842_v18, %v504_v35 }
 0x23b   :  { %v691_v38 = vpop.eup %690  ;;  %529 = vst [vmem:[%s947_s3] sm:$0xff] %v513_v5  ;;  %v498_v40 = vmul.f32 0.6931472, %v689_v36  ;;  %v474_v41 = vpop.xlane.xlu0 %473 }
 0x23c   :  { %v460_v42 = vpop.xlane.xlu1 %459  ;;  %540 = vst [vmem:[%s947_s3 + $0x58] sm:$0xff] %v524_v12  ;;  %v484_v43 = vmul.f32 0.6931472, %v691_v38  ;;  %700 = vlog2.f32 %v474_v41 }
 0x23d   :  { %v521_v11 = vsub.f32 %v840_v17, %v498_v40  ;;  %702 = vlog2.f32 %v460_v42 }
 0x23e   :  { %v693_v44 = vpop.eup %692  ;;  %v514_v18 = vsub.f32 %v846_v23, %v484_v43 }
 0x23f   :  { %v695_v46 = vpop.eup %694  ;;  %537 = vst [vmem:[%s947_s3 + $0x40] sm:$0xff] %v521_v11  ;;  %v494_v48 = vmul.f32 0.6931472, %v693_v44  ;;  %v478_v49 = vpop.xlane.xlu0 %477 }
 0x240   :  { %v476_v50 = vpop.xlane.xlu1 %475  ;;  %530 = vst [vmem:[%s947_s3 + $0x8] sm:$0xff] %v514_v18  ;;  %v500_v51 = vmul.f32 0.6931472, %v695_v46  ;;  %704 = vlog2.f32 %v478_v49 }
 0x241   :  { %v519_v17 = vsub.f32 %v851_v29, %v494_v48  ;;  %706 = vlog2.f32 %v476_v50 }
 0x242   :  { %v697_v52 = vpop.eup %696  ;;  %v522_v23 = vsub.f32 %v848_v24, %v500_v51 }
 0x243   :  { %v699_v54 = vpop.eup %698  ;;  %535 = vst [vmem:[%s947_s3 + $0x30] sm:$0xff] %v519_v17  ;;  %v490_v56 = vmul.f32 0.6931472, %v697_v52 }
 0x244   :  { %v480_v57 = vpop.xlane.xlu1 %479  ;;  %538 = vst [vmem:[%s947_s3 + $0x48] sm:$0xff] %v522_v23  ;;  %v496_v58 = vmul.f32 0.6931472, %v699_v54 }
 0x245   :  { %708 = vlog2.f32 %v480_v57  ;;  %v517_v59 = vsub.f32 %v857_v37, %v490_v56 }
 0x246   :  { %v701_v29 = vpop.eup %700  ;;  %v520_v60 = vsub.f32 %v854_v31, %v496_v58 }
 0x247   :  { %v703_v61 = vpop.eup %702  ;;  %533 = vst [vmem:[%s947_s3 + $0x20] sm:$0xff] %v517_v59  ;;  %v506_v24 = vmul.f32 0.6931472, %v701_v29 }
 0x248   :  { %536 = vst [vmem:[%s947_s3 + $0x38] sm:$0xff] %v520_v60  ;;  %v492_v62 = vmul.f32 0.6931472, %v703_v61 }
 0x249   :  { %v525_v63 = vsub.f32 %v864_v45, %v506_v24 }
 0x24a   :  { %v705_v0 = vpop.eup %704  ;;  %v518_v1 = vsub.f32 %v860_v39, %v492_v62 }
 0x24b   :  { %v707_v37 = vpop.eup %706  ;;  %541 = vst [vmem:[%s947_s3 + $0x60] sm:$0xff] %v525_v63  ;;  %v510_v31 = vmul.f32 0.6931472, %v705_v0 }
 0x24c   :  { %534 = vst [vmem:[%s947_s3 + $0x28] sm:$0xff] %v518_v1  ;;  %v508_v2 = vmul.f32 0.6931472, %v707_v37 }
 0x24d   :  { %v527_v3 = vsub.f32 %v872_v53, %v510_v31 }
 0x24e   :  { %v526_v7 = vsub.f32 %v868_v47, %v508_v2 }
 0x24f   :  { %v709_v4 = vpop.eup %708  ;;  %543 = vst [vmem:[%s947_s3 + $0x70] sm:$0xff] %v527_v3 }
 0x250   :  { %v512_v39 = vmul.f32 0.6931472, %v709_v4  ;;  %542 = vst [vmem:[%s947_s3 + $0x68] sm:$0xff] %v526_v7 }
 0x252   :  { %v528_v45 = vsub.f32 %v876_v55, %v512_v39 }
 0x254   :  { %544 = vst [vmem:[%s947_s3 + $0x78] sm:$0xff] %v528_v45 }

</bundles_post_ra>
